<compile_context>
chip_gen: v5e
topology: v5e:2x2
jax: 0.10.0
libtpu: 0.0.40
codegen_flags: <defaults>
</compile_context>

<pallas_src>
import functools

import jax
import jax.numpy as jnp
from jax.experimental import pallas as pl
from jax.experimental.pallas import tpu as pltpu


def _round_up(x: int, m: int) -> int:
    return ((x + m - 1) // m) * m


def _qnet_kernel(x_ref, w1_ref, b1_ref, w2_ref, b2_ref, o_ref):
    # linear1: x @ W1 + b1  (MXU, f32 accumulation)
    h = jnp.dot(x_ref[...], w1_ref[...], preferred_element_type=jnp.float32)
    h = h + b1_ref[...]                       # b1 is (1, Hp), broadcasts over batch
    # F.leaky_relu, negative_slope=0.01 -> single vmax instead of compare+select
    h = jnp.maximum(h, 0.01 * h)
    # linear2: h @ W2 + b2
    h = h.astype(w2_ref.dtype)                # no-op for f32; bf16 path feeds MXU bf16
    out = jnp.dot(h, w2_ref[...], preferred_element_type=jnp.float32)
    out = out + b2_ref[...]                   # b2 is (1, Op)
    o_ref[...] = out.astype(o_ref.dtype)


@functools.partial(jax.jit, static_argnames=("tile_b", "compute_dtype"))
def linear_qnet_forward(x, w1, b1, w2, b2, *, tile_b=512, compute_dtype=None):
    """x: (B, I); w1: (I, H); b1: (1, H); w2: (H, O); b2: (1, O) -> (B, O) f32."""
    B, I = x.shape
    H = w1.shape[1]
    O = w2.shape[1]
    out_dtype = x.dtype

    # ---- lane-dense padding of feature dims (zeros -> numerically exact) ----
    Hp = _round_up(H, 128)
    Op = _round_up(O, 128)

    # ---- batch tiling (tile_b tuned for f32; cap at the padded batch) ----
    tb = min(tile_b, _round_up(B, 8))
    Bp = _round_up(B, tb)
    grid = (Bp // tb,)

    cdt = compute_dtype if compute_dtype is not None else x.dtype

    x_p = jnp.pad(x, ((0, Bp - B), (0, 0))).astype(cdt)
    w1_p = jnp.pad(w1, ((0, 0), (0, Hp - H))).astype(cdt)
    b1_p = jnp.pad(b1, ((0, 0), (0, Hp - H))).astype(jnp.float32)
    w2_p = jnp.pad(w2, ((0, Hp - H), (0, Op - O))).astype(cdt)
    b2_p = jnp.pad(b2, ((0, 0), (0, Op - O))).astype(jnp.float32)

    # Weights/biases use a constant index_map -> resident across grid steps;
    # x/out are tiled over the batch and double-buffered by the BlockSpec pipeline.
    in_specs = [
        pl.BlockSpec((tb, I), lambda i: (i, 0)),     # x tile
        pl.BlockSpec((I, Hp), lambda i: (0, 0)),     # W1 (resident)
        pl.BlockSpec((1, Hp), lambda i: (0, 0)),     # b1 (resident)
        pl.BlockSpec((Hp, Op), lambda i: (0, 0)),    # W2 (resident)
        pl.BlockSpec((1, Op), lambda i: (0, 0)),     # b2 (resident)
    ]
    out_specs = pl.BlockSpec((tb, Op), lambda i: (i, 0))

    cost = pl.CostEstimate(
        flops=2 * B * (I * H + H * O),
        transcendentals=0,
        bytes_accessed=(x_p.size * x_p.dtype.itemsize
                        + w1_p.size * w1_p.dtype.itemsize
                        + b1_p.size * b1_p.dtype.itemsize
                        + w2_p.size * w2_p.dtype.itemsize
                        + b2_p.size * b2_p.dtype.itemsize
                        + Bp * Op * jnp.dtype(out_dtype).itemsize),
    )

    out_padded = pl.pallas_call(
        _qnet_kernel,
        out_shape=jax.ShapeDtypeStruct((Bp, Op), out_dtype),
        grid=grid,
        in_specs=in_specs,
        out_specs=out_specs,
        compiler_params=pltpu.CompilerParams(
            dimension_semantics=("parallel",),       # 2 TCs on v7x; no-op on v5e/v6e
            vmem_limit_bytes=32 * 1024 * 1024,       # explicit budget, safe on 64 MiB v7x
        ),
        cost_estimate=cost,
    )(x_p, w1_p, b1_p, w2_p, b2_p)

    return out_padded[:B, :O]


def init_params(key, input_size, hidden_size, output_size):
    """Deterministic init mimicking PyTorch nn.Linear default (uniform +-1/sqrt(fan_in))."""
    k1, k2, k3, k4 = jax.random.split(key, 4)
    bound1 = 1.0 / (input_size ** 0.5)
    bound2 = 1.0 / (hidden_size ** 0.5)
    # stored transposed: (in_features, out_features)
    w1 = jax.random.uniform(k1, (input_size, hidden_size), jnp.float32, -bound1, bound1)
    b1 = jax.random.uniform(k2, (1, hidden_size), jnp.float32, -bound1, bound1)
    w2 = jax.random.uniform(k3, (hidden_size, output_size), jnp.float32, -bound2, bound2)
    b2 = jax.random.uniform(k4, (1, output_size), jnp.float32, -bound2, bound2)
    return w1, b1, w2, b2


# TODO(synk): Linear_QNet.save() (torch.save of the state_dict to ./model) is file
# I/O with no Pallas equivalent and is intentionally not implemented.

if __name__ == "__main__":
    # Small shapes consistent with the module: batch=8, input=16, hidden=32, output=4
    B, I, H, O = 8, 16, 32, 4
    key = jax.random.PRNGKey(0)
    kx, kp = jax.random.split(key)
    x = jax.random.normal(kx, (B, I), dtype=jnp.float32)
    w1, b1, w2, b2 = init_params(kp, I, H, O)

    out = linear_qnet_forward(x, w1, b1, w2, b2)
    out = jax.block_until_ready(out)

    # Pure-JAX reference of the same semantics (Linear -> leaky_relu(0.01) -> Linear)
    h_ref = x @ w1 + b1
    h_ref = jnp.where(h_ref > 0, h_ref, 0.01 * h_ref)
    ref = h_ref @ w2 + b2
    assert out.shape == (B, O)
    assert jnp.allclose(out, ref, atol=1e-5, rtol=1e-5)

    # Also exercise the multi-tile pipelined path (B > TILE_B) and the bf16 option.
    B2 = 1536
    x2 = jax.random.normal(jax.random.PRNGKey(1), (B2, I), dtype=jnp.float32)
    out2 = jax.block_until_ready(
        linear_qnet_forward(x2, w1, b1, w2, b2, tile_b=512,
                            compute_dtype=jnp.bfloat16))
    h2 = x2 @ w1 + b1
    h2 = jnp.where(h2 > 0, h2, 0.01 * h2)
    ref2 = h2 @ w2 + b2
    assert out2.shape == (B2, O)
    assert jnp.allclose(out2, ref2, atol=5e-2, rtol=5e-2)  # bf16 MXU tolerance

    print("KERNEL_OK")
</pallas_src>

<mosaic_0001>
module attributes {stable_mosaic.version = 11 : i64} {
  func.func @_qnet_kernel(%arg0: i32, %arg1: memref<8x16xf32, #tpu.memory_space<vmem>>, %arg2: memref<16x128xf32, #tpu.memory_space<vmem>>, %arg3: memref<1x128xf32, #tpu.memory_space<vmem>>, %arg4: memref<128x128xf32, #tpu.memory_space<vmem>>, %arg5: memref<1x128xf32, #tpu.memory_space<vmem>>, %arg6: memref<8x128xf32, #tpu.memory_space<vmem>>) attributes {dimension_semantics = [#tpu.dimension_semantics<parallel>], iteration_bounds = array<i64: 1>, scalar_prefetch = 0 : i64, scratch_operands = 0 : i64, tpu.core_type = #tpu.core_type<tc>, window_params = [{transform_indices = @transform_0, window_bounds = array<i64: 8, 16>}, {pipeline_mode = #tpu.pipeline_mode<synchronous>, transform_indices = @transform_1, window_bounds = array<i64: 16, 128>}, {pipeline_mode = #tpu.pipeline_mode<synchronous>, transform_indices = @transform_2, window_bounds = array<i64: 1, 128>}, {pipeline_mode = #tpu.pipeline_mode<synchronous>, transform_indices = @transform_3, window_bounds = array<i64: 128, 128>}, {pipeline_mode = #tpu.pipeline_mode<synchronous>, transform_indices = @transform_4, window_bounds = array<i64: 1, 128>}, {transform_indices = @transform_5, window_bounds = array<i64: 8, 128>}]} {
    %c0 = arith.constant 0 : index
    %c0_0 = arith.constant 0 : index
    %0 = vector.load %arg1[%c0, %c0_0] : memref<8x16xf32, #tpu.memory_space<vmem>>, vector<8x16xf32>
    %c0_1 = arith.constant 0 : index
    %c0_2 = arith.constant 0 : index
    %1 = vector.load %arg2[%c0_1, %c0_2] : memref<16x128xf32, #tpu.memory_space<vmem>>, vector<16x128xf32>
    %cst = arith.constant dense<0.000000e+00> : vector<8x128xf32>
    %2 = tpu.matmul %0, %1, %cst {dimension_numbers = #tpu.dot_dimension_numbers<[1], [0], [0], [1], [0, 0, 1, 1], [], []>} : vector<8x16xf32>, vector<16x128xf32>, vector<8x128xf32> -> vector<8x128xf32>
    %c0_3 = arith.constant 0 : index
    %c0_4 = arith.constant 0 : index
    %3 = vector.load %arg3[%c0_3, %c0_4] : memref<1x128xf32, #tpu.memory_space<vmem>>, vector<1x128xf32>
    %4 = vector.broadcast %3 : vector<1x128xf32> to vector<8x128xf32>
    %5 = arith.addf %2, %4 : vector<8x128xf32>
    %cst_5 = arith.constant 0.00999999977 : f32
    %6 = vector.broadcast %cst_5 : f32 to vector<8x128xf32>
    %7 = arith.mulf %6, %5 : vector<8x128xf32>
    %8 = arith.maximumf %5, %7 : vector<8x128xf32>
    %c0_6 = arith.constant 0 : index
    %c0_7 = arith.constant 0 : index
    %9 = vector.load %arg4[%c0_6, %c0_7] : memref<128x128xf32, #tpu.memory_space<vmem>>, vector<128x128xf32>
    %cst_8 = arith.constant dense<0.000000e+00> : vector<8x128xf32>
    %10 = tpu.matmul %8, %9, %cst_8 {dimension_numbers = #tpu.dot_dimension_numbers<[1], [0], [0], [1], [0, 0, 1, 1], [], []>} : vector<8x128xf32>, vector<128x128xf32>, vector<8x128xf32> -> vector<8x128xf32>
    %c0_9 = arith.constant 0 : index
    %c0_10 = arith.constant 0 : index
    %11 = vector.load %arg5[%c0_9, %c0_10] : memref<1x128xf32, #tpu.memory_space<vmem>>, vector<1x128xf32>
    %12 = vector.broadcast %11 : vector<1x128xf32> to vector<8x128xf32>
    %13 = arith.addf %10, %12 : vector<8x128xf32>
    %c0_11 = arith.constant 0 : index
    %c0_12 = arith.constant 0 : index
    %14 = vector.load %arg6[%c0_11, %c0_12] : memref<8x128xf32, #tpu.memory_space<vmem>>, vector<8x128xf32>
    tpu.vector_store %arg6[%c0_11, %c0_12], %13 {strides = array<i32>} : memref<8x128xf32, #tpu.memory_space<vmem>>, vector<8x128xf32>,
    return
  }
  func.func @transform_0(%arg0: i32) -> (i32, i32) {
    %c0_i32 = arith.constant 0 : i32
    %c0_i32_0 = arith.constant 0 : i32
    return %arg0, %c0_i32 : i32, i32
  }
  func.func @transform_1(%arg0: i32) -> (i32, i32) {
    %c0_i32 = arith.constant 0 : i32
    %c0_i32_0 = arith.constant 0 : i32
    %c0_i32_1 = arith.constant 0 : i32
    return %c0_i32, %c0_i32_0 : i32, i32
  }
  func.func @transform_2(%arg0: i32) -> (i32, i32) {
    %c0_i32 = arith.constant 0 : i32
    %c0_i32_0 = arith.constant 0 : i32
    %c0_i32_1 = arith.constant 0 : i32
    return %c0_i32, %c0_i32_0 : i32, i32
  }
  func.func @transform_3(%arg0: i32) -> (i32, i32) {
    %c0_i32 = arith.constant 0 : i32
    %c0_i32_0 = arith.constant 0 : i32
    %c0_i32_1 = arith.constant 0 : i32
    return %c0_i32, %c0_i32_0 : i32, i32
  }
  func.func @transform_4(%arg0: i32) -> (i32, i32) {
    %c0_i32 = arith.constant 0 : i32
    %c0_i32_0 = arith.constant 0 : i32
    %c0_i32_1 = arith.constant 0 : i32
    return %c0_i32, %c0_i32_0 : i32, i32
  }
  func.func @transform_5(%arg0: i32) -> (i32, i32) {
    %c0_i32 = arith.constant 0 : i32
    %c0_i32_0 = arith.constant 0 : i32
    return %arg0, %c0_i32 : i32, i32
  }
}

</mosaic_0001>

<bundles_post_ra>
// kernel: linear_qnet_forward.1
= control target key start
LH: loop header
LB: loop body
LE: loop exit
PB: predicated region body
PF: predicated region fallthrough
CT: control target
= control target key end

     0   :  { %vm27_vm0 = vcmask 130048   ;;  %s197_s1 = inlined_call_operand.vmem [shape: f32[16,128], index: 1, kind: input, shape index: {}]   ;;  %s198_s0 = inlined_call_operand.vmem [shape: f32[8,16], index: 0, kind: input, shape index: {}]   ;;  %s199_s3 = inlined_call_operand.vmem [shape: f32[128,128], index: 3, kind: input, shape index: {}]   ;;  %s200_s2 = inlined_call_operand.vmem [shape: f32[1,128], index: 2, kind: input, shape index: {}]   ;;  %s201_s4 = inlined_call_operand.vmem [shape: f32[1,128], index: 4, kind: input, shape index: {}]   ;;  %s202_s5 = inlined_call_operand.vmem [shape: f32[8,128], index: 5, kind: output, shape index: {}]  }
   0x1   :  { %v22_v0 = vld [vmem:[%s197_s1 + $0x8] sm:$0xff]  ;;  %v21_v1 = vld [vmem:[%s197_s1] sm:$0xff]  ;;  %v68_v3 = vld [vmem:[%s199_s3 + $0x78] sm:$0xff] }
   0x2   :  { %45 = vmatpush.msra.mxu0 %v22_v0  ;;  %v20_v2 = vld [vmem:[%s198_s0] sm:$0xff]  ;;  %v67_v4 = vld [vmem:[%s199_s3 + $0x70] sm:$0xff]  ;;  %73 = vmatpush.msra.mxu1 %v68_v3  ;;  %v66_v5 = vld [vmem:[%s199_s3 + $0x68] sm:$0xff] }
   0x3   :  { %v65_v6 = vld [vmem:[%s199_s3 + $0x60] sm:$0xff]  ;;  %v64_v7 = vld [vmem:[%s199_s3 + $0x58] sm:$0xff]  ;;  %v63_v8 = vld [vmem:[%s199_s3 + $0x50] sm:$0xff] }
   0x4   :  { %46 = vmatpush.msra.mxu0 %v21_v1  ;;  %74 = vmatpush.msra.mxu1 %v67_v4  ;;  %v62_v9 = vld [vmem:[%s199_s3 + $0x48] sm:$0xff]  ;;  %v61_v10 = vld [vmem:[%s199_s3 + $0x40] sm:$0xff]  ;;  %v60_v11 = vld [vmem:[%s199_s3 + $0x38] sm:$0xff] }
   0x5   :  { %98 = vmatmul.msk.f32.vlgmr.msra.gmra.mxu0 %vm27_vm0, %v20_v2  ;;  %v59_v12 = vld [vmem:[%s199_s3 + $0x30] sm:$0xff]  ;;  %v58_v13 = vld [vmem:[%s199_s3 + $0x28] sm:$0xff]  ;;  %v57_v14 = vld [vmem:[%s199_s3 + $0x20] sm:$0xff] }
   0x6   :  { %75 = vmatpush.msra.mxu1 %v66_v5  ;;  %v56_v15 = vld [vmem:[%s199_s3 + $0x18] sm:$0xff]  ;;  %v55_v16 = vld [vmem:[%s199_s3 + $0x10] sm:$0xff]  ;;  %v54_v17 = vld [vmem:[%s199_s3 + $0x8] sm:$0xff] }
   0x7   :  { %v53_v18 = vld [vmem:[%s199_s3] sm:$0xff] }
   0x8   :  { %76 = vmatpush.msra.mxu1 %v65_v6  ;;  %v99_v19 = vld [vmem:[%s200_s2] ss:$0 sm:$0xff] }
   0x9   :  { %v100_v24 = vld [vmem:[%s201_s4] ss:$0 sm:$0xff] }
   0xa   :  { %77 = vmatpush.msra.mxu1 %v64_v7 }
   0xc   :  { %78 = vmatpush.msra.mxu1 %v63_v8 }
   0xe   :  { %79 = vmatpush.msra.mxu1 %v62_v9 }
  0x10   :  { %80 = vmatpush.msra.mxu1 %v61_v10 }
  0x12   :  { %81 = vmatpush.msra.mxu1 %v60_v11 }
  0x14   :  { %82 = vmatpush.msra.mxu1 %v59_v12 }
  0x16   :  { %83 = vmatpush.msra.mxu1 %v58_v13 }
  0x18   :  { %84 = vmatpush.msra.mxu1 %v57_v14 }
  0x1a   :  { %85 = vmatpush.msra.mxu1 %v56_v15 }
  0x1c   :  { %86 = vmatpush.msra.mxu1 %v55_v16 }
  0x1e   :  { %87 = vmatpush.msra.mxu1 %v54_v17 }
  0x20   :  { %88 = vmatpush.msra.mxu1 %v53_v18 }
  0x82   :  { %v48_v20 = vpop.f32.mrf.mxu0 }
  0x83   :  { %v49_v21 = vadd.f32 %v99_v19, %v48_v20 }
  0x85   :  { %v51_v22 = vmul.f32 0.01, %v49_v21 }
  0x87   :  { %v52_v23 = vmax.f32 %v49_v21, %v51_v22 }
  0x89   :  { %89 = vmatmul.f32.vlgmr.msra.gmra.mxu1 %v52_v23 }
 0x106   :  { %v90_v25 = vpop.f32.mrf.mxu1 }
 0x107   :  { %v91_v26 = vadd.f32 %v100_v24, %v90_v25 }
 0x109   :  { %93 = vst [vmem:[%s202_s5] sm:$0xff] %v91_v26 }

</bundles_post_ra>
